<compile_context>
chip_gen: v6e
topology: v6e:2x2x1
jax: 0.10.0
libtpu: 0.0.40
codegen_flags: <defaults>
</compile_context>

<pallas_src>
import functools
import math

import jax
import jax.numpy as jnp
from jax.experimental import pallas as pl
from jax.experimental.pallas import tpu as pltpu

# ---- GraphNetConfig-derived sizes -------------------------------------------
NODE_SIZE = 64                        # GraphNetConfig.node_size
HG_MULTIPLIER = 2                     # GraphNetConfig.hG_multiplier
HG_SIZE = NODE_SIZE * HG_MULTIPLIER   # 128  -> lane-dense output
MAX_TILE_N = 512                      # big node tiles: amortize per-step overhead, fill MXU


def _round_up(x, m):
    return ((x + m - 1) // m) * m


# ---- Pallas kernel: fused (Linear_f, Linear_g) + sigmoid gate + row-sum ------
def _aggregator_kernel(x_ref, w_ref, b_ref, o_ref, *, tile_n, valid_tail, multi_step):
    # x_ref: (tile_n, NODE_SIZE)   w_ref: (NODE_SIZE, 2*HG_SIZE)  b_ref: (1, 2*HG_SIZE)
    # o_ref: (1, HG_SIZE) f32 -- VMEM-resident across the grid (accumulated directly).
    # One MXU pass covers both heads: w = [Wf | Wg].
    y = jnp.dot(x_ref[...], w_ref[...], preferred_element_type=jnp.float32) + b_ref[...]
    f = y[:, :HG_SIZE]
    g = jax.nn.sigmoid(y[:, HG_SIZE:])
    fg = f * g

    def masked_sum():
        # Ragged tail rows (>= valid_tail) hold garbage (no host-side padding);
        # a where-SELECT (not a multiplicative mask) keeps any NaN/Inf out.
        rows = jax.lax.broadcasted_iota(jnp.int32, (tile_n, 1), 0)
        return jnp.sum(jnp.where(rows < valid_tail, fg, 0.0), axis=0, keepdims=True)

    def full_sum():
        return jnp.sum(fg, axis=0, keepdims=True)

    if not multi_step:
        # Single grid step (common small-graph case): no carry, no pl.when regions.
        o_ref[...] = masked_sum() if valid_tail != tile_n else full_sum()
    else:
        i = pl.program_id(0)
        last = pl.num_programs(0) - 1

        @pl.when(i == 0)
        def _init():
            o_ref[...] = jnp.zeros_like(o_ref)

        if valid_tail != tile_n:
            # Mask only the ragged last tile; steady-state steps skip the
            # iota/compare/select VPU filler entirely.
            @pl.when(i != last)
            def _steady():
                o_ref[...] += full_sum()

            @pl.when(i == last)
            def _tail():
                o_ref[...] += masked_sum()
        else:
            o_ref[...] += full_sum()


# ---- Wrapper -----------------------------------------------------------------
def fuse_aggregator_params(wf_t, bf, wg_t, bg):
    """Pre-fuse both heads ONCE at parameter-init time (hoisted out of forward)."""
    w_fused = jnp.concatenate([wf_t, wg_t], axis=1)                 # (64, 256)
    b_fused = jnp.concatenate([bf, bg], axis=0).reshape(1, 2 * HG_SIZE)
    return w_fused, b_fused


def aggregator_forward(node_vectors, w_fused, b_fused):
    """h_G = sum_i f_m(h_i) * sigmoid(g_m(h_i)),  shape (1, HG_SIZE)."""
    n = node_vectors.shape[0]
    if n == 0:
        # Empty-graph branch of Aggregator.forward (static, host-side).
        # TODO(synk): this relies on a static node count; not valid if n becomes traced.
        return jnp.zeros((1, HG_SIZE), jnp.float32)

    tile_n = min(_round_up(n, 8), MAX_TILE_N)          # sublane-aligned node tile
    n_tiles = pl.cdiv(n, tile_n)
    valid_tail = n - (n_tiles - 1) * tile_n            # valid rows in the final tile
    multi_step = n_tiles > 1

    kernel = functools.partial(
        _aggregator_kernel, tile_n=tile_n, valid_tail=valid_tail, multi_step=multi_step)

    cost = pl.CostEstimate(
        flops=2 * n_tiles * tile_n * NODE_SIZE * (2 * HG_SIZE) + 3 * n_tiles * tile_n * HG_SIZE,
        transcendentals=n_tiles * tile_n * HG_SIZE,
        bytes_accessed=(node_vectors.size + w_fused.size + b_fused.size + HG_SIZE) * 4,
    )

    return pl.pallas_call(
        kernel,
        out_shape=jax.ShapeDtypeStruct((1, HG_SIZE), jnp.float32),
        grid=(n_tiles,),
        in_specs=[
            pl.BlockSpec((tile_n, NODE_SIZE), lambda i: (i, 0)),
            # Same block every step -> fused weight/bias stay VMEM-resident.
            pl.BlockSpec((NODE_SIZE, 2 * HG_SIZE), lambda i: (0, 0)),
            pl.BlockSpec((1, 2 * HG_SIZE), lambda i: (0, 0)),
        ],
        out_specs=pl.BlockSpec((1, HG_SIZE), lambda i: (0, 0)),
        compiler_params=pltpu.CompilerParams(dimension_semantics=("arbitrary",)),
        cost_estimate=cost,
    )(node_vectors, w_fused, b_fused)


# ---- Parameter init (mimics PyTorch nn.Linear default init) ------------------
def init_linear(key, in_size, out_size):
    bound = 1.0 / math.sqrt(in_size)
    kw, kb = jax.random.split(key)
    # PyTorch weight is (out, in); kept transposed as (in, out) for x @ W.
    w_t = jax.random.uniform(kw, (in_size, out_size), jnp.float32, -bound, bound)
    b = jax.random.uniform(kb, (out_size,), jnp.float32, -bound, bound)
    return w_t, b


if __name__ == "__main__":
    key = jax.random.PRNGKey(0)
    kf, kg, kx, kx2 = jax.random.split(key, 4)

    wf_t, bf = init_linear(kf, NODE_SIZE, HG_SIZE)
    wg_t, bg = init_linear(kg, NODE_SIZE, HG_SIZE)
    w_fused, b_fused = fuse_aggregator_params(wf_t, bf, wg_t, bg)   # hoisted fusion

    def ref_fwd(x):  # pure-JAX reference of Aggregator.forward
        f = jnp.dot(x, wf_t, precision=jax.lax.Precision.HIGHEST) + bf
        g = jax.nn.sigmoid(jnp.dot(x, wg_t, precision=jax.lax.Precision.HIGHEST) + bg)
        return (f * g).sum(axis=0, keepdims=True)

    # Small graph (N=20, not a multiple of 8): single-grid-step path + ragged-tail mask.
    x_small = jax.random.normal(kx, (20, NODE_SIZE), jnp.float32)
    out_small = jax.block_until_ready(aggregator_forward(x_small, w_fused, b_fused))
    assert out_small.shape == (1, HG_SIZE)
    assert jnp.allclose(out_small, ref_fwd(x_small), atol=1e-4, rtol=1e-4)

    # Larger graph: exercises the multi-step accumulation path (3 tiles of 512, ragged tail).
    x_big = jax.random.normal(kx2, (1200, NODE_SIZE), jnp.float32)
    out_big = jax.block_until_ready(aggregator_forward(x_big, w_fused, b_fused))
    assert out_big.shape == (1, HG_SIZE)
    assert jnp.allclose(out_big, ref_fwd(x_big), atol=1e-3, rtol=1e-3)

    # Empty-graph branch (len(gn.nodes) == 0 -> zeros(1, hG_size)).
    empty = jax.block_until_ready(
        aggregator_forward(jnp.zeros((0, NODE_SIZE), jnp.float32), w_fused, b_fused))
    assert empty.shape == (1, HG_SIZE) and bool(jnp.all(empty == 0.0))

    print("KERNEL_OK")
</pallas_src>

<mosaic_0001>
module attributes {stable_mosaic.version = 11 : i64} {
  func.func @_aggregator_kernel(%arg0: i32, %arg1: memref<24x64xf32, #tpu.memory_space<vmem>>, %arg2: memref<64x256xf32, #tpu.memory_space<vmem>>, %arg3: memref<1x256xf32, #tpu.memory_space<vmem>>, %arg4: memref<1x128xf32, #tpu.memory_space<vmem>>) attributes {dimension_semantics = [#tpu.dimension_semantics<arbitrary>], iteration_bounds = array<i64: 1>, scalar_prefetch = 0 : i64, scratch_operands = 0 : i64, tpu.core_type = #tpu.core_type<tc>, window_params = [{transform_indices = @transform_0, window_bounds = array<i64: 24, 64>}, {pipeline_mode = #tpu.pipeline_mode<synchronous>, transform_indices = @transform_1, window_bounds = array<i64: 64, 256>}, {pipeline_mode = #tpu.pipeline_mode<synchronous>, transform_indices = @transform_2, window_bounds = array<i64: 1, 256>}, {pipeline_mode = #tpu.pipeline_mode<synchronous>, transform_indices = @transform_3, window_bounds = array<i64: 1, 128>}]} {
    %c0 = arith.constant 0 : index
    %c0_0 = arith.constant 0 : index
    %0 = vector.load %arg1[%c0, %c0_0] : memref<24x64xf32, #tpu.memory_space<vmem>>, vector<24x64xf32>
    %c0_1 = arith.constant 0 : index
    %c0_2 = arith.constant 0 : index
    %1 = vector.load %arg2[%c0_1, %c0_2] : memref<64x256xf32, #tpu.memory_space<vmem>>, vector<64x256xf32>
    %cst = arith.constant dense<0.000000e+00> : vector<24x256xf32>
    %2 = tpu.matmul %0, %1, %cst {dimension_numbers = #tpu.dot_dimension_numbers<[1], [0], [0], [1], [0, 0, 1, 1], [], []>} : vector<24x64xf32>, vector<64x256xf32>, vector<24x256xf32> -> vector<24x256xf32>
    %c0_3 = arith.constant 0 : index
    %c0_4 = arith.constant 0 : index
    %3 = vector.load %arg3[%c0_3, %c0_4] : memref<1x256xf32, #tpu.memory_space<vmem>>, vector<1x256xf32>
    %4 = vector.broadcast %3 : vector<1x256xf32> to vector<24x256xf32>
    %5 = arith.addf %2, %4 : vector<24x256xf32>
    %6 = vector.extract_strided_slice %5 {offsets = [0, 0], sizes = [24, 128], strides = [1, 1]} : vector<24x256xf32> to vector<24x128xf32>
    %7 = vector.extract_strided_slice %5 {offsets = [0, 128], sizes = [24, 128], strides = [1, 1]} : vector<24x256xf32> to vector<24x128xf32>
    %8 = arith.negf %7 : vector<24x128xf32>
    %9 = math.exp %8 : vector<24x128xf32>
    %cst_5 = arith.constant 1.000000e+00 : f32
    %10 = vector.broadcast %cst_5 : f32 to vector<24x128xf32>
    %11 = arith.addf %10, %9 : vector<24x128xf32>
    %12 = arith.divf %10, %11 : vector<24x128xf32>
    %13 = arith.mulf %6, %12 : vector<24x128xf32>
    %14 = tpu.iota {dimensions = array<i32: 0>} : vector<24x1xi32>
    %c20_i32 = arith.constant 20 : i32
    %15 = vector.broadcast %c20_i32 : i32 to vector<24x1xi32>
    %16 = arith.cmpi slt, %14, %15 : vector<24x1xi32>
    %cst_6 = arith.constant 0.000000e+00 : f32
    %17 = vector.shape_cast %16 : vector<24x1xi1> to vector<24x1xi1>
    %18 = vector.broadcast %17 : vector<24x1xi1> to vector<24x128xi1>
    %19 = vector.broadcast %cst_6 : f32 to vector<24x128xf32>
    %20 = arith.select %18, %13, %19 : vector<24x128xi1>, vector<24x128xf32>
    %cst_7 = arith.constant dense<0.000000e+00> : vector<128xf32>
    %21 = vector.multi_reduction <add>, %20, %cst_7 [0] : vector<24x128xf32> to vector<128xf32>
    %22 = vector.shape_cast %21 : vector<128xf32> to vector<1x128xf32>
    %c0_8 = arith.constant 0 : index
    %c0_9 = arith.constant 0 : index
    %23 = vector.load %arg4[%c0_8, %c0_9] : memref<1x128xf32, #tpu.memory_space<vmem>>, vector<1x128xf32>
    tpu.vector_store %arg4[%c0_8, %c0_9], %22 {strides = array<i32>} : memref<1x128xf32, #tpu.memory_space<vmem>>, vector<1x128xf32>,
    return
  }
  func.func @transform_0(%arg0: i32) -> (i32, i32) {
    %c0_i32 = arith.constant 0 : i32
    %c0_i32_0 = arith.constant 0 : i32
    return %arg0, %c0_i32 : i32, i32
  }
  func.func @transform_1(%arg0: i32) -> (i32, i32) {
    %c0_i32 = arith.constant 0 : i32
    %c0_i32_0 = arith.constant 0 : i32
    %c0_i32_1 = arith.constant 0 : i32
    return %c0_i32, %c0_i32_0 : i32, i32
  }
  func.func @transform_2(%arg0: i32) -> (i32, i32) {
    %c0_i32 = arith.constant 0 : i32
    %c0_i32_0 = arith.constant 0 : i32
    %c0_i32_1 = arith.constant 0 : i32
    return %c0_i32, %c0_i32_0 : i32, i32
  }
  func.func @transform_3(%arg0: i32) -> (i32, i32) {
    %c0_i32 = arith.constant 0 : i32
    %c0_i32_0 = arith.constant 0 : i32
    %c0_i32_1 = arith.constant 0 : i32
    return %c0_i32, %c0_i32_0 : i32, i32
  }
}

</mosaic_0001>

<bundles_post_ra>
// kernel: tpu_custom_call.1
= control target key start
LH: loop header
LB: loop body
LE: loop exit
PB: predicated region body
PF: predicated region fallthrough
CT: control target
= control target key end

     0   :  { %8 = vsyncpa [#allocation3], 0  ;;  %s377_s0 = inlined_call_operand.hbm [shape: f32[20,64], index: 0, kind: input, shape index: {}]   ;;  %s378_s1 = inlined_call_operand.hbm [shape: f32[64,256], index: 1, kind: input, shape index: {}]   ;;  %s379_s2 = inlined_call_operand.vmem [shape: f32[1,256], index: 2, kind: input, shape index: {}]   ;;  %s380_s3 = inlined_call_operand.hbm [shape: f32[1,128], index: 3, kind: output, shape index: {}]  }
   0x1   :  { %9 = vsyncpa [#allocation6], 0 }
   0x2   :  { %10 = vsyncpa [#allocation4], 0  ;;  %s337_s12 = smov [#allocation2]  }
   0x3   :  { %s16_s13 = sshll.u32 %s337_s12, 4  ;;  %s17_s13 = int_to_ptr.vmem [resolvable:$true] %s16_s13 }
   0x4   :  { %s279_s14 = scalar_lea.vmem %s17_s13, 384  ;;  %p284_p1 = scmp.lt.s32.totalorder %s17_s13, %s17_s13 }
   0x5   :  { %p280_p0 = scmp.ne.s32.totalorder %s17_s13, %s279_s14  ;;  %p285_p2 = scmp.lt.s32.totalorder %s279_s14, %s279_s14 }
   0x7   :  { %p286_p3 = por %p285_p2, %p284_p1 }
   0x9   :  { %p287_p4 = pnand %p286_p3, %p280_p0 }
   0xb   :  { %290 = shalt.err (!%p287_p4)
}
   0xc   :  { %s338_s15 = smov 128   ;;  %s339_s16 = smov 8  }
   0xd   :  { %22 = dma.hbm_to_vmem [thread:$0]  %s377_s0, 384, %s17_s13, [#allocation3], %s338_s15, %s338_s15, %s339_s16  }
   0xe   :  { %s340_s19 = smov [#allocation5]  }
   0xf   :  { %s28_s20 = sshll.u32 %s340_s19, 4  ;;  %s29_s20 = int_to_ptr.vmem [resolvable:$true] %s28_s20 }
  0x10   :  { %s299_s21 = scalar_lea.vmem %s29_s20, 2048  ;;  %p304_p6 = scmp.lt.s32.totalorder %s29_s20, %s29_s20 }
  0x11   :  { %p300_p5 = scmp.ne.s32.totalorder %s29_s20, %s299_s21  ;;  %p305_p7 = scmp.lt.s32.totalorder %s299_s21, %s299_s21 }
  0x13   :  { %p306_p8 = por %p305_p7, %p304_p6 }
  0x15   :  { %p307_p9 = pnand %p306_p8, %p300_p5 }
  0x17   :  { %310 = shalt.err (!%p307_p9)
}
  0x18   :  { %s341_s22 = smov 256   ;;  %s342_s23 = smov 16  }
  0x19   :  { %34 = dma.hbm_to_vmem [thread:$0]  %s378_s1, 2048, %s29_s20, [#allocation6], %s341_s22, %s341_s22, %s342_s23  }
  0x1a   :  { %331 = dma.done.wait [#allocation3], 384  }
  0x1b   :  { %332 = vsyncadd [#allocation3], 4294966912 }
  0x1c   :  { %333 = dma.done.wait [#allocation6], 2048  }
  0x1d   :  { %334 = vsyncadd [#allocation6], 4294965248  ;;  %v343_v0 = vmov 0.0   ;;  %v61_v1 = vld [vmem:[#allocation5 + $0x78] sm:$0xff]  ;;  %v60_v2 = vld [vmem:[#allocation5 + $0x70] sm:$0xff]  ;;  %vm74_vm0 = vcmask 523264   ;;  %v64_v20 = vlaneseq }
  0x1e   :  { %148 = vmatprep.mubr.f32.mxu0 %v343_v0  ;;  %154 = vmatprep.mubr.f32.mxu1 %v343_v0  ;;  %v59_v3 = vld [vmem:[#allocation5 + $0x68] sm:$0xff]  ;;  %v58_v4 = vld [vmem:[#allocation5 + $0x60] sm:$0xff]  ;;  %v57_v5 = vld [vmem:[#allocation5 + $0x58] sm:$0xff] }
  0x1f   :  { %100 = vmatprep.subr.mxu0 %v61_v1  ;;  %235 = vmatprep.subr.mxu1 %v61_v1  ;;  %v56_v6 = vld [vmem:[#allocation5 + $0x50] sm:$0xff]  ;;  %v55_v7 = vld [vmem:[#allocation5 + $0x48] sm:$0xff]  ;;  %v54_v8 = vld [vmem:[#allocation5 + $0x40] sm:$0xff]  ;;  %v65_v21 = vshrl.u32 %v64_v20, 7 }
  0x20   :  { %101 = vmatpush1.msra.mxu0 %v60_v2  ;;  %243 = vmatpush1.msra.mxu1 %v60_v2  ;;  %v53_v9 = vld [vmem:[#allocation5 + $0x38] sm:$0xff]  ;;  %v52_v10 = vld [vmem:[#allocation5 + $0x30] sm:$0xff]  ;;  %v51_v11 = vld [vmem:[#allocation5 + $0x28] sm:$0xff] }
  0x21   :  { %102 = vmatprep.subr.mxu0 %v59_v3  ;;  %236 = vmatprep.subr.mxu1 %v59_v3  ;;  %v50_v12 = vld [vmem:[#allocation5 + $0x20] sm:$0xff]  ;;  %v49_v13 = vld [vmem:[#allocation5 + $0x18] sm:$0xff]  ;;  %v48_v14 = vld [vmem:[#allocation5 + $0x10] sm:$0xff]  ;;  %v70_v22 = vsub.s32 1, %v65_v21  ;;  %v66_v43 = vsub.s32 0, %v65_v21  ;;  %v191_v48 = vadd.s32 16, %v65_v21 }
  0x22   :  { %103 = vmatpush1.msra.mxu0 %v58_v4  ;;  %244 = vmatpush1.msra.mxu1 %v58_v4  ;;  %v47_v15 = vld [vmem:[#allocation5 + $0x8] sm:$0xff]  ;;  %v46_v16 = vld [vmem:[#allocation5] sm:$0xff]  ;;  %v44_v18 = vld [vmem:[#allocation2 + $0x8] sm:$0xff] }
  0x23   :  { %104 = vmatprep.subr.mxu0 %v57_v5  ;;  %237 = vmatprep.subr.mxu1 %v57_v5  ;;  %v43_v17 = vld [vmem:[#allocation2] sm:$0xff]  ;;  %v45_v19 = vld [vmem:[#allocation2 + $0x10] sm:$0xff]  ;;  %vm194_vm1 = vcmp.lt.s32.totalorder %v191_v48, 20 }
  0x24   :  { %105 = vmatpush1.msra.mxu0 %v56_v6  ;;  %245 = vmatpush1.msra.mxu1 %v56_v6  ;;  %v62_v23 = vld [vmem:[%s379_s2] sm:$0x3]  ;;  %s344_s2 = smov [#allocation7]  }
  0x25   :  { %106 = vmatprep.subr.mxu0 %v55_v7  ;;  %238 = vmatprep.subr.mxu1 %v55_v7  ;;  %v71_v24 = vrot.slane %v62_v23, %v70_v22  ;;  %v67_v44 = vrot.slane %v62_v23, %v66_v43  ;;  %s219_s26 = sshll.u32 %s344_s2, 4  ;;  %s220_s26 = int_to_ptr.vmem [resolvable:$true] %s219_s26 }
  0x26   :  { %107 = vmatpush1.msra.mxu0 %v54_v8  ;;  %246 = vmatpush1.msra.mxu1 %v54_v8  ;;  %s311_s27 = scalar_lea.vmem %s220_s26, 16  ;;  %s315_s28 = scalar_lea.vmem %s220_s26, 32 }
  0x27   :  { %108 = vmatprep.subr.mxu0 %v53_v9  ;;  %239 = vmatprep.subr.mxu1 %v53_v9  ;;  %p312_p10 = scmp.ne.s32.totalorder %s220_s26, %s311_s27  ;;  %p316_p11 = scmp.lt.s32.totalorder %s220_s26, %s220_s26 }
  0x28   :  { %109 = vmatpush1.msra.mxu0 %v52_v10  ;;  %247 = vmatpush1.msra.mxu1 %v52_v10  ;;  %p317_p12 = scmp.lt.s32.totalorder %s315_s28, %s311_s27 }
  0x29   :  { %110 = vmatprep.subr.mxu0 %v51_v11  ;;  %240 = vmatprep.subr.mxu1 %v51_v11 }
  0x2a   :  { %111 = vmatpush1.msra.mxu0 %v50_v12  ;;  %248 = vmatpush1.msra.mxu1 %v50_v12  ;;  %p318_p13 = por %p317_p12, %p316_p11 }
  0x2b   :  { %112 = vmatprep.subr.mxu0 %v49_v13  ;;  %241 = vmatprep.subr.mxu1 %v49_v13 }
  0x2c   :  { %113 = vmatpush1.msra.mxu0 %v48_v14  ;;  %249 = vmatpush1.msra.mxu1 %v48_v14  ;;  %p319_p0 = pnand %p318_p13, %p312_p10 }
  0x2d   :  { %114 = vmatprep.subr.mxu0 %v47_v15  ;;  %242 = vmatprep.subr.mxu1 %v47_v15 }
  0x2e   :  { %115 = vmatpush1.msra.mxu0 %v46_v16  ;;  %250 = vmatpush1.msra.mxu1 %v46_v16 }
  0x2f   :  { %229 = vmatmul.mubr.msk.f32.vlgmr.msra.gmra.mxu0 %vm74_vm0, %v43_v17  ;;  %230 = vmatmul.mubr.msk.f32.vlgmr.msra.gmra.mxu1 %vm74_vm0, %v44_v18 }
  0x30   :  { %160 = vmatprep.mubr.f32.mxu1 %v343_v0 }
  0x33   :  { %231 = vmatmul.mubr.msk.f32.gmra.mxu1 %vm74_vm0, %v45_v19 }
  0xef   :  { %v150_v25 = vpop.f32.mrf.mxu0  ;;  %v156_v26 = vpop.f32.mrf.mxu1 }
  0xf0   :  { %v151_v46 = vadd.f32 %v150_v25, %v67_v44  ;;  %v157_v47 = vadd.f32 %v156_v26, %v67_v44 }
  0xf1   :  { %v152_v27 = vpop.f32.mrf.mxu0  ;;  %v158_v28 = vpop.f32.mrf.mxu1 }
  0xf2   :  { %v153_v29 = vadd.f32 %v152_v27, %v71_v24  ;;  %v159_v30 = vadd.f32 %v158_v28, %v71_v24 }
  0xf3   :  { %v162_v31 = vpop.f32.mrf.mxu1 }
  0xf4   :  { %v232_v32 = vmul.f32 -1.442695, %v153_v29  ;;  %v233_v33 = vmul.f32 -1.442695, %v159_v30  ;;  %v163_v52 = vadd.f32 %v162_v31, %v67_v44 }
  0xf5   :  { %v164_v34 = vpop.f32.mrf.mxu1 }
  0xf6   :  { %259 = vpow2.f32 %v232_v32  ;;  %v165_v35 = vadd.f32 %v164_v34, %v71_v24 }
  0xf7   :  { %261 = vpow2.f32 %v233_v33 }
  0xf8   :  { %v234_v36 = vmul.f32 -1.442695, %v165_v35 }
  0xfa   :  { %263 = vpow2.f32 %v234_v36 }
 0x103   :  { %v260_v37 = vpop.eup %259 }
 0x104   :  { %v262_v38 = vpop.eup %261  ;;  %v176_v39 = vadd.f32 1.0, %v260_v37 }
 0x105   :  { %v177_v40 = vadd.f32 1.0, %v262_v38 }
 0x106   :  { %265 = vrcp.f32 %v176_v39 }
 0x107   :  { %v264_v41 = vpop.eup %263  ;;  %267 = vrcp.f32 %v177_v40 }
 0x108   :  { %v178_v42 = vadd.f32 1.0, %v264_v41 }
 0x10a   :  { %269 = vrcp.f32 %v178_v42 }
 0x113   :  { %v266_v45 = vpop.eup %265 }
 0x114   :  { %v268_v49 = vpop.eup %267  ;;  %v185_v50 = vmul.f32 %v266_v45, %v151_v46 }
 0x115   :  { %v186_v51 = vmul.f32 %v268_v49, %v157_v47 }
 0x117   :  { %v270_v53 = vpop.eup %269  ;;  %v204_v55 = vadd.f32 %v186_v51, %v185_v50 }
 0x118   :  { %v187_v54 = vmul.f32 %v270_v53, %v163_v52 }
 0x11a   :  { %v203_v56 = vsel %vm194_vm1, %v187_v54, 0.0 }
 0x11b   :  { %v205_v57 = vadd.f32 %v204_v55, %v203_v56 }
 0x11d   :  { %v206_v58 = vrot.slane %v205_v57, 4 }
 0x11f   :  { %v207_v59 = vadd.f32 %v206_v58, %v205_v57 }
 0x121   :  { %v208_v60 = vrot.slane %v207_v59, 2 }
 0x123   :  { %v209_v61 = vadd.f32 %v208_v60, %v207_v59 }
 0x125   :  { %v210_v62 = vrot.slane %v209_v61, 1 }
 0x127   :  { %v211_v63 = vadd.f32 %v210_v62, %v209_v61 }
 0x129   :  { %212 = vst [vmem:[#allocation7] sm:$0x1] %v211_v63 }
 0x12a   :  { %322 = shalt.err (!%p319_p0)
}
 0x12b   :  { %222 = dma.vmem_to_hbm [thread:$0]  %s220_s26, 16, %s380_s3, [#allocation4]  }
 0x12c   :  { %335 = dma.done.wait [#allocation4], 16  }
 0x12d   :  { %336 = vsyncadd [#allocation4], 4294967280 }
 0x12e   :  { %226 = vsyncpa [#allocation3], 1 }
 0x12f   :  { %227 = vsyncpa [#allocation6], 1 }
 0x130   :  { %228 = vsyncpa [#allocation4], 1 }

</bundles_post_ra>
